<compile_context>
chip_gen: v6e
topology: v6e:2x2x1
jax: 0.10.0
libtpu: 0.0.40
codegen_flags: <defaults>
</compile_context>

<pallas_src>
import math

import jax
import jax.numpy as jnp
from jax.experimental import pallas as pl
from jax.experimental.pallas import tpu as pltpu


def _round_up(x, m):
    return (x + m - 1) // m * m


def _linear_kernel(x_ref, w_ref, b_ref, o_ref):
    # x_ref: (tm, D) bf16   w_ref: (D, C_pad) bf16   b_ref: (1, C_pad) f32
    acc = jnp.dot(x_ref[...], w_ref[...], preferred_element_type=jnp.float32)
    o_ref[...] = (acc + b_ref[...]).astype(o_ref.dtype)


def linear_decoder(x, weight, bias, *, tm=512):
    """x: (B, N, d_model); weight: (d_model, num_classes); bias: (num_classes,)."""
    B, N, D = x.shape
    C = weight.shape[1]
    M = B * N
    out_dtype = x.dtype

    # Lane-dense output: pad class dim to a multiple of 128 (zeros), slice after.
    C_pad = _round_up(C, 128)
    if C_pad != C:
        weight = jnp.pad(weight, ((0, 0), (0, C_pad - C)))
        bias = jnp.pad(bias, (0, C_pad - C))

    # Token tile: multiple of 8 (sublane constraint), never larger than needed.
    tm = min(_round_up(max(tm, 8), 8), _round_up(M, 8))
    grid_m = pl.cdiv(M, tm)

    # bf16 inputs halve the dominant HBM read traffic; accumulate in f32.
    x2d = x.reshape(M, D).astype(jnp.bfloat16)
    w = weight.astype(jnp.bfloat16)
    b2d = bias.reshape(1, C_pad).astype(jnp.float32)

    out2d = pl.pallas_call(
        _linear_kernel,
        out_shape=jax.ShapeDtypeStruct((M, C_pad), out_dtype),
        grid_spec=pl.GridSpec(
            grid=(grid_m,),
            in_specs=[
                pl.BlockSpec((tm, D), lambda i: (i, 0)),        # token tile (pipelined)
                pl.BlockSpec((D, C_pad), lambda i: (0, 0)),     # weight, resident
                pl.BlockSpec((1, C_pad), lambda i: (0, 0)),     # bias row, resident
            ],
            out_specs=pl.BlockSpec((tm, C_pad), lambda i: (i, 0)),
        ),
        compiler_params=pltpu.CompilerParams(
            dimension_semantics=("parallel",),        # megacore sharding on v7x
            vmem_limit_bytes=32 * 1024 * 1024,        # safe on v5e/v6e/v7x
        ),
    )(x2d, w, b2d)

    out2d = out2d[:, :C]
    size = math.isqrt(N)
    assert size * size == N, "token count must be a perfect square"
    return out2d.reshape(B, size, size, C)


def reference(x, weight, bias):
    B, N, _ = x.shape
    y = jnp.einsum("bnd,dc->bnc", x, weight) + bias
    size = math.isqrt(N)
    return y.reshape(B, size, size, -1)


if __name__ == "__main__":
    # Small shapes consistent with the module: B=2, N=16 tokens (4x4 grid),
    # d_model=32, num_classes=8.
    B, N, d_model, num_classes = 2, 16, 32, 8

    key = jax.random.PRNGKey(0)
    kx, kw, kb = jax.random.split(key, 3)

    x = jax.random.normal(kx, (B, N, d_model), dtype=jnp.float32)

    # nn.Linear default init: U(-1/sqrt(d_model), 1/sqrt(d_model)) for W and b.
    bound = 1.0 / math.sqrt(d_model)
    # PyTorch stores weight as (num_classes, d_model); we store the transpose.
    weight = jax.random.uniform(
        kw, (d_model, num_classes), minval=-bound, maxval=bound, dtype=jnp.float32
    )
    bias = jax.random.uniform(
        kb, (num_classes,), minval=-bound, maxval=bound, dtype=jnp.float32
    )

    # tm=8 exercises the multi-tile (grid > 1) pipelined path at these tiny shapes;
    # real segmenter sizes use the 512-row default.
    out = linear_decoder(x, weight, bias, tm=8)
    out = jax.block_until_ready(out)

    ref = reference(x, weight, bias)
    assert out.shape == (B, 4, 4, num_classes), out.shape
    # bf16 inputs with f32 accumulation: tolerance loosened accordingly.
    assert jnp.allclose(out, ref, atol=2e-2, rtol=2e-2), "mismatch vs reference"

    print("KERNEL_OK")
</pallas_src>

<mosaic_0001>
module attributes {stable_mosaic.version = 11 : i64} {
  func.func @_linear_kernel(%arg0: i32, %arg1: memref<8x32xbf16, #tpu.memory_space<vmem>>, %arg2: memref<32x128xbf16, #tpu.memory_space<vmem>>, %arg3: memref<1x128xf32, #tpu.memory_space<vmem>>, %arg4: memref<8x128xf32, #tpu.memory_space<vmem>>) attributes {dimension_semantics = [#tpu.dimension_semantics<parallel>], iteration_bounds = array<i64: 4>, scalar_prefetch = 0 : i64, scratch_operands = 0 : i64, tpu.core_type = #tpu.core_type<tc>, window_params = [{transform_indices = @transform_0, window_bounds = array<i64: 8, 32>}, {pipeline_mode = #tpu.pipeline_mode<synchronous>, transform_indices = @transform_1, window_bounds = array<i64: 32, 128>}, {pipeline_mode = #tpu.pipeline_mode<synchronous>, transform_indices = @transform_2, window_bounds = array<i64: 1, 128>}, {transform_indices = @transform_3, window_bounds = array<i64: 8, 128>}]} {
    %c0 = arith.constant 0 : index
    %c0_0 = arith.constant 0 : index
    %0 = vector.load %arg1[%c0, %c0_0] : memref<8x32xbf16, #tpu.memory_space<vmem>>, vector<8x32xbf16>
    %c0_1 = arith.constant 0 : index
    %c0_2 = arith.constant 0 : index
    %1 = vector.load %arg2[%c0_1, %c0_2] : memref<32x128xbf16, #tpu.memory_space<vmem>>, vector<32x128xbf16>
    %cst = arith.constant dense<0.000000e+00> : vector<8x128xf32>
    %2 = tpu.matmul %0, %1, %cst {dimension_numbers = #tpu.dot_dimension_numbers<[1], [0], [0], [1], [0, 0, 1, 1], [], []>} : vector<8x32xbf16>, vector<32x128xbf16>, vector<8x128xf32> -> vector<8x128xf32>
    %c0_3 = arith.constant 0 : index
    %c0_4 = arith.constant 0 : index
    %3 = vector.load %arg3[%c0_3, %c0_4] : memref<1x128xf32, #tpu.memory_space<vmem>>, vector<1x128xf32>
    %4 = vector.broadcast %3 : vector<1x128xf32> to vector<8x128xf32>
    %5 = arith.addf %2, %4 : vector<8x128xf32>
    %c0_5 = arith.constant 0 : index
    %c0_6 = arith.constant 0 : index
    %6 = vector.load %arg4[%c0_5, %c0_6] : memref<8x128xf32, #tpu.memory_space<vmem>>, vector<8x128xf32>
    tpu.vector_store %arg4[%c0_5, %c0_6], %5 {strides = array<i32>} : memref<8x128xf32, #tpu.memory_space<vmem>>, vector<8x128xf32>,
    return
  }
  func.func @transform_0(%arg0: i32) -> (i32, i32) {
    %c0_i32 = arith.constant 0 : i32
    %c0_i32_0 = arith.constant 0 : i32
    return %arg0, %c0_i32 : i32, i32
  }
  func.func @transform_1(%arg0: i32) -> (i32, i32) {
    %c0_i32 = arith.constant 0 : i32
    %c0_i32_0 = arith.constant 0 : i32
    %c0_i32_1 = arith.constant 0 : i32
    return %c0_i32, %c0_i32_0 : i32, i32
  }
  func.func @transform_2(%arg0: i32) -> (i32, i32) {
    %c0_i32 = arith.constant 0 : i32
    %c0_i32_0 = arith.constant 0 : i32
    %c0_i32_1 = arith.constant 0 : i32
    return %c0_i32, %c0_i32_0 : i32, i32
  }
  func.func @transform_3(%arg0: i32) -> (i32, i32) {
    %c0_i32 = arith.constant 0 : i32
    %c0_i32_0 = arith.constant 0 : i32
    return %arg0, %c0_i32 : i32, i32
  }
}

</mosaic_0001>

<bundles_post_ra>
// kernel: tpu_custom_call.1
= control target key start
LH: loop header
LB: loop body
LE: loop exit
PB: predicated region body
PF: predicated region fallthrough
CT: control target
= control target key end

     0   :  { %8 = vsyncpa [#allocation3], 0  ;;  %s776_s0 = inlined_call_operand.hbm [shape: bf16[32,32], index: 0, kind: input, shape index: {}]   ;;  %s777_s1 = inlined_call_operand.hbm [shape: bf16[32,128], index: 1, kind: input, shape index: {}]   ;;  %s778_s2 = inlined_call_operand.vmem [shape: f32[1,128], index: 2, kind: input, shape index: {}]   ;;  %s779_s3 = inlined_call_operand.hbm [shape: f32[32,128], index: 3, kind: output, shape index: {}]  }
   0x1   :  { %10 = vsyncpa [#allocation3 + $0x1], 0 }
   0x2   :  { %11 = vsyncpa [#allocation6], 0 }
   0x3   :  { %12 = vsyncpa [#allocation4], 0 }
   0x4   :  { %14 = vsyncpa [#allocation4 + $0x1], 0  ;;  %s608_s12 = smov 0   ;;  %s610_s13 = smov 0  }
   0x5   :  { %s612_s14 = smov 0   ;;  %s614_s15 = smov 0  }
   0x6 LB: > { %s629_s16 = sadd.s32 4294967295, %s579_s15   ;;  %s365_s17 = sadd.s32 4294967294, %s579_s15   ;;  %s579_s15 = sphi %s614_s15, %s800_s15   ;;  %s575_s14 = sphi %s612_s14, %s799_s14   ;;  %s571_s13 = sphi %s610_s13, %s798_s13   ;;  %s567_s12 = sphi %s608_s12, %s797_s12  }
   0x7   : > { %p40_p0 = scmp.ne.s32.totalorder %s571_s13, %s567_s12  ;;  %p780_p1 = scmp.eq.s32.totalorder %s629_s16, 0 }
   0x8   : > { %p112_p3 = scmp.eq.s32.totalorder %s365_s17, 3  ;;  %p366_p5 = scmp.ge.s32.totalorder %s579_s15, 1 }
   0x9   : > { %p638_p4 = por %p780_p1, %p40_p0  ;;  %p119_p7 = scmp.lt.s32.totalorder %s579_s15, 5 }
   0xa   : > { %p643_p6 = por %p112_p3, %p40_p0  ;;  %s581_s21 = smov [#allocation5]  }
   0xb   : > { %s784_s18 = scalar_select %p638_p4, 1, 0 }
   0xc   : > { %s785_s19 = scalar_select %p643_p6, 1, 0 }
   0xd   : > { %p648_p8 = pnand %p366_p5, %p119_p7  ;;  %s131_s22 = sshll.u32 %s581_s21, 4  ;;  %s132_s22 = int_to_ptr.vmem [resolvable:$true] %s131_s22 }
   0xe   : > { %s661_s24 = sadd.s32 1, %s579_s15   ;;  %s27_s25 = sadd.s32 1, %s575_s14 }
   0xf   : > { %s786_s20 = scalar_select %p648_p8, 1, 0 }
  0x10   : > { %p402_p9 = pneg %p648_p8  ;;  %s24_s26 = ssub.s32 %s579_s15, %s661_s24 }
  0x11   : > { %s468_s27 = scalar_lea.vmem %s132_s22, 256  ;;  %p476_p3 = scmp.lt.s32.totalorder %s132_s22, %s132_s22 }
  0x12   : > { %p656_p10 = pnand %p402_p9, %p780_p1  ;;  %p469_p12 = scmp.ne.s32.totalorder %s132_s22, %s468_s27 }
  0x13   : > { %p477_p5 = scmp.lt.s32.totalorder %s468_s27, %s468_s27 }
  0x14   : > { %p459_p11 = pneg %p656_p10 }
  0x15   : > { %p478_p7 = por %p477_p5, %p476_p3 }
  0x16   : > { %p471_p13 = pnand %p469_p12, %p459_p11 }
  0x18   : > { %p472_p0 = pneg %p471_p13 }
  0x1a   : > { %p479_p2 = pnand %p478_p7, %p472_p0 }
  0x1c   : > { %482 = shalt.err (!%p479_p2)
}
  0x1d   : > { %s582_s28 = smov 64   ;;  %s583_s29 = smov 4  }
  0x1e   : > { %405 = dma.hbm_to_vmem [thread:$0]  (!%p656_p10), %s777_s1, 256, %s132_s22, [#allocation6], %s582_s28, %s582_s28, %s583_s29  }
  0x1f   : > { %p25_p9 = scmp.eq.s32.totalorder %s24_s26, 0  ;;  %p34_p11 = scmp.ne.s32.totalorder %s575_s14, %s571_s13 }
  0x20   : > { %p35_p12 = scmp.eq.s32.totalorder %s579_s15, 0  ;;  %p415_p2 = scmp.lt.s32.totalorder %s579_s15, 4 }
  0x21   : > { %s678_s5 = scalar_select %p25_p9, %s575_s14, %s27_s25  }
  0x22   : > { %p36_p13 = por %p35_p12, %p34_p11  ;;  %p788_p0 = scmp.eq.s32.totalorder %s629_s16, 3 }
  0x23   : > { %s148_s7 = sand.u32 1, %s575_s14   ;;  %s370_s8 = sshll.u32 %s579_s15, 6 }
  0x24   : > { %p682_p3 = por %p788_p0, %p34_p11  ;;  %s369_s9 = sshll.u32 %s148_s7, 2 }
  0x25   : > { %s691_s17 = scalar_lea.hbm %s776_s0, %s370_s8  ;;  %s152_s21 = scalar_lea.vmem [#allocation2], %s369_s9 }
  0x26   : > { %s789_s6 = scalar_select %p682_p3, 1, 0 }
  0x27   : > { %s159_s22 = sshll.u32 %s152_s21, 4  ;;  %p693_p10 = pnand %p415_p2, %p36_p13  ;;  %s160_s22 = int_to_ptr.vmem [resolvable:$true] %s159_s22 }
  0x28   : > { %s149_s25 = scalar_lea.sflag [#allocation3], %s148_s7  ;;  %s483_s26 = scalar_lea.hbm %s691_s17, 64 }
  0x29   : > { %p484_p5 = scmp.ne.s32.totalorder %s691_s17, %s483_s26  ;;  %p485_p7 = pneg %p693_p10 }
  0x2a   : > { %s488_s29 = scalar_lea.hbm %s776_s0, 256  ;;  %p489_p12 = scmp.lt.s32.totalorder %s691_s17, %s776_s0 }
  0x2b   : > { %p486_p9 = pnand %p485_p7, %p484_p5  ;;  %p490_p2 = scmp.lt.s32.totalorder %s488_s29, %s483_s26 }
  0x2d   : > { %p487_p11 = pneg %p486_p9  ;;  %p491_p13 = por %p490_p2, %p489_p12 }
  0x2f   : > { %p492_p0 = pnand %p491_p13, %p487_p11 }
  0x31   : > { %495 = shalt.err (!%p492_p0)
}
  0x32   : > { %s496_s8 = scalar_lea.vmem %s160_s22, 64  ;;  %s584_s7 = smov [#allocation2]  }
  0x33   : > { %p497_p1 = scmp.ne.s32.totalorder %s160_s22, %s496_s8  ;;  %s501_s9 = sshll.u32 %s584_s7, 4  ;;  %s502_s9 = int_to_ptr.vmem [resolvable:$false] %s501_s9 }
  0x34   : > { %s503_s10 = scalar_lea.vmem %s502_s9, 128  ;;  %p504_p5 = scmp.lt.s32.totalorder %s160_s22, %s502_s9 }
  0x35   : > { %p499_p6 = pnand %p497_p1, %p485_p7  ;;  %p505_p9 = scmp.lt.s32.totalorder %s503_s10, %s496_s8 }
  0x37   : > { %p500_p3 = pneg %p499_p6  ;;  %p506_p4 = por %p505_p9, %p504_p5 }
  0x39   : > { %p507_p8 = pnand %p506_p4, %p500_p3 }
  0x3b   : > { %510 = shalt.err (!%p507_p8)
}
  0x3c   : > { %409 = dma.hbm_to_vmem [thread:$0]  (!%p693_p10), %s691_s17, 64, %s160_s22, %s149_s25  }
  0x3d   : > { %p791_p11 = scmp.ne.s32.totalorder %s786_s20, 0 }
  0x3e   : > { %s714_s11 = sand.u32 (!%p791_p11), 1, %s571_s13   ;;  %p792_p1 = scmp.ne.s32.totalorder (!%p791_p11), %s784_s18, 0 }
  0x3f   : > { %168 = sbr.rel (%p791_p11) target bundleno = 290 (0x122), region = 32  ;;  %s372_s21 = sshll.u32 (!%p791_p11), %s714_s11, 2 }
  0x40   : > { %s171_s26 = scalar_lea.sflag (!%p791_p11), [#allocation3], %s714_s11  ;;  %s174_s27 = scalar_lea.vmem (!%p791_p11), [#allocation2], %s372_s21 }
  0x44   : > { %554 = dma.done.wait (%p792_p1), %s171_s26, 64  }
  0x45   : > { %556 = vsyncadd (%p792_p1), %s171_s26, 4294967232  ;;  %p793_p4 = scmp.eq.s32.totalorder %s629_s16, 0 }
  0x47   : > { %558 = dma.done.wait (%p793_p4), [#allocation6], 256   ;;  %p794_p6 = pmov %p793_p4 }
  0x48   : > { %v585_v0 = vmov 0.0   ;;  %vm586_vm0 = vmmov 0   ;;  %v455_v1 = vld [vmem:[#allocation5 + $0x8] sm:$0xff]   ;;  %v456_v2 = vld [vmem:[#allocation5] sm:$0xff]   ;;  %v202_v3 = vld [vmem:[%s174_s27] sm:$0xf] }
  0x49   : > { %560 = vsyncadd (%p794_p6), [#allocation6], 4294967040  ;;  %386 = vmatprep.subr.bf16.mxu0 %v585_v0  ;;  %390 = vmatprep.mubr.msk.bf16.mxu0 %vm586_vm0, %v585_v0  ;;  %vm226_vm1 = vcmask 261120   ;;  %s374_s18 = sshll.u32 %s714_s11, 3  ;;  %v375_v4 = vld [vmem:[%s778_s2] ss:$0 sm:$0xff] }
  0x4a   : > { %387 = vmatpush3.bf16.msra.mxu0 %v455_v1  ;;  %s380_s22 = sshll.u32 %s629_s16, 7  ;;  %s200_s23 = scalar_lea.vmem [#allocation7], %s374_s18 }
  0x4b   : > { %388 = vmatprep.subr.bf16.mxu0 %v585_v0  ;;  %s285_s25 = sshll.u32 %s200_s23, 4  ;;  %s734_s30 = scalar_lea.hbm %s779_s3, %s380_s22  ;;  %s736_s25 = int_to_ptr.vmem [resolvable:$true] %s285_s25 }
  0x4c   : > { %s272_s4 = scalar_lea.sflag [#allocation4], %s714_s11  ;;  %s511_s8 = scalar_lea.vmem %s736_s25, 128 }
  0x4d   : > { %p512_p8 = scmp.ne.s32.totalorder %s736_s25, %s511_s8  ;;  %p795_p3 = scmp.ne.s32.totalorder %s789_s6, 0 }
  0x4e   : > { %389 = vmatpush3.bf16.msra.mxu0 %v456_v2  ;;  %s587_s16 = smov [#allocation7]  }
  0x4f   : > { %p513_p10 = pnand %p512_p8, %p795_p3  ;;  %s515_s7 = sshll.u32 %s587_s16, 4  ;;  %s516_s7 = int_to_ptr.vmem [resolvable:$false] %s515_s7 }
  0x50   : > { %s517_s9 = scalar_lea.vmem %s516_s7, 256  ;;  %p518_p12 = scmp.lt.s32.totalorder %s736_s25, %s516_s7 }
  0x51   : > { %391 = vmatmul.mubr.msk.bf16.vlgmr.msra.gmra.mxu0 %vm226_vm1, %v202_v3  ;;  %p514_p7 = pneg %p513_p10  ;;  %p519_p2 = scmp.lt.s32.totalorder %s517_s9, %s511_s8 }
  0x53   : > { %p520_p13 = por %p519_p2, %p518_p12 }
  0x55   : > { %p521_p0 = pnand %p520_p13, %p514_p7 }
 0x111   : > { %v264_v5 = vpop.f32.mrf.mxu0 }
 0x112   : > { %v265_v6 = vadd.f32 %v375_v4, %v264_v5 }
 0x113   : > { %v392_v7 = vpop.f32.mrf.mxu0 }
 0x114   : > { %270 = vst [vmem:[%s200_s23] sm:$0xff] %v265_v6 }
 0x115   : > { %v267_v8 = vpop.f32.mrf.mxu0 }
 0x116   : > { %524 = shalt.err (!%p521_p0)
}
 0x117   : > { %s525_s10 = scalar_lea.hbm %s734_s30, 128  ;;  %s529_s26 = scalar_lea.hbm %s779_s3, 512 }
 0x118   : > { %p526_p5 = scmp.ne.s32.totalorder %s734_s30, %s525_s10  ;;  %p530_p1 = scmp.lt.s32.totalorder %s734_s30, %s779_s3 }
 0x119   : > { %p531_p4 = scmp.lt.s32.totalorder %s529_s26, %s525_s10 }
 0x11a   : > { %p527_p9 = pnand %p526_p5, %p795_p3 }
 0x11b   : > { %p532_p6 = por %p531_p4, %p530_p1 }
 0x11c   : > { %p528_p11 = pneg %p527_p9 }
 0x11e   : > { %p533_p8 = pnand %p532_p6, %p528_p11 }
 0x120   : > { %536 = shalt.err (!%p533_p8)
}
 0x121   : > { %400 = dma.vmem_to_hbm [thread:$0]  (%p795_p3), %s736_s25, 128, %s734_s30, %s272_s4   ;;  %v393_v9 = vpop.f32.mrf.mxu0 }
 0x122 PF: > { %p417_p10 = scmp.ge.s32.totalorder %s579_s15, 2  ;;  %s297_s20 = sand.u32 1, %s567_s12  }
 0x123   : > { %p796_p7 = scmp.ne.s32.totalorder %s785_s19, 0  ;;  %s298_s17 = scalar_lea.sflag [#allocation4], %s297_s20 }
 0x125   : > { %p411_p12 = pnand %p417_p10, %p796_p7 }
 0x127   : > { %p412_p2 = pneg %p411_p12 }
 0x129   : > { %562 = dma.done.wait (%p412_p2), %s298_s17, 128  }
 0x12a   : > { %564 = vsyncadd (%p412_p2), %s298_s17, 4294967168  ;;  %p17_p13 = scmp.ge.s32.totalorder %s661_s24, 6   ;;  %s797_s12 = smov %s571_s13 }
 0x12b   : > { %s798_s13 = smov %s575_s14  ;;  %s799_s14 = smov %s678_s5 }
 0x12c   : > { %s800_s15 = smov %s661_s24  ;;  %19 = sbr.rel (!%p17_p13) target bundleno = 6 (0x6), region = 81 }
 0x131   :  { %303 = vsyncpa [#allocation3], 1 }
 0x132   :  { %305 = vsyncpa [#allocation3 + $0x1], 1 }
 0x133   :  { %306 = vsyncpa [#allocation6], 1 }
 0x134   :  { %307 = vsyncpa [#allocation4], 1 }
 0x135   :  { %309 = vsyncpa [#allocation4 + $0x1], 1 }

</bundles_post_ra>
